<compile_context>
chip_gen: v5e
topology: v5e:2x2
jax: 0.10.0
libtpu: 0.0.40
codegen_flags: <defaults>
</compile_context>

<pallas_src>
import functools

import jax
import jax.numpy as jnp
import numpy as np
from jax.experimental import pallas as pl
from jax.experimental.pallas import tpu as pltpu


NEG_INF = -1e30


def _round_up(a, b):
    return (a + b - 1) // b * b


def proj_kernel(x_ref, w_ref, att_ref, xh_ref, a_ref):
    """Stage 1: fused projection for all heads + attention scalars.

    x_ref:  [TM, F_in]  bf16
    w_ref:  [F_in, H*C] bf16
    att_ref:[H*C, 2H]   f32 block-diagonal [A_src | A_dst]
    xh_ref: [TM, H*C]   bf16 out
    a_ref:  [TM, 2H]    f32 out  (cols 0..H = a_src per head, H..2H = a_dst)
    """
    xh = jnp.dot(x_ref[...], w_ref[...], preferred_element_type=jnp.float32)
    xh_ref[...] = xh.astype(xh_ref.dtype)
    a_ref[...] = jnp.dot(xh, att_ref[...], preferred_element_type=jnp.float32)


def attn_kernel(a_dst_ref, a_srcT_ref, xh_ref, mask_ref, bias_ref, o_ref,
                *, num_heads, head_dim):
    """Stage 2: per destination-row-tile attention softmax + aggregation (all heads).

    a_dst_ref:  [TM, H]      f32
    a_srcT_ref: [H, N]       f32
    xh_ref:     [N, H*C]     bf16 (resident across row tiles)
    mask_ref:   [TM, N]      bf16 additive mask (0 edge / -1e30 no edge)
    bias_ref:   [1, H*C]     f32
    o_ref:      [TM, H*C]    f32
    """
    mask_bias = mask_ref[...].astype(jnp.float32)            # hoisted out of head loop
    outs = []
    for h in range(num_heads):                               # static unroll, H is small
        a_dst = a_dst_ref[:, h:h + 1]                        # [TM, 1]
        a_src = a_srcT_ref[h:h + 1, :]                       # [1, N]
        e = a_dst + a_src                                    # [TM, N]
        e = jnp.where(e > 0, e, jnp.float32(0.2) * e)        # leaky_relu(., 0.2)
        e = e + mask_bias                                    # additive mask (no selects)
        m = jnp.max(e, axis=-1, keepdims=True)
        p = jnp.exp(e - m)                                   # masked entries underflow to 0
        denom = jnp.sum(p, axis=-1, keepdims=True)           # > 0 (self loops present)
        alpha = p * pl.reciprocal(denom, approx=True)        # EUP reciprocal
        xh_h = xh_ref[:, h * head_dim:(h + 1) * head_dim]    # [N, C] bf16
        outs.append(jnp.dot(alpha.astype(jnp.bfloat16), xh_h,
                            preferred_element_type=jnp.float32))
    out = jnp.concatenate(outs, axis=-1) + bias_ref[...]     # [TM, H*C], lane-dense store
    o_ref[...] = out.astype(o_ref.dtype)


def gat_forward(x, adj, w_full, att_src, att_dst, bias, *, num_heads, row_tile=256):
    """x: [N, F_in] f32, adj: [N, N] {0,1}, w_full: [F_in, H*C],
    att_src/att_dst: [H, C], bias: [H*C]  ->  [N, H*C] f32."""
    N, F_in = x.shape
    HC = w_full.shape[1]
    H = num_heads
    C = HC // H

    # Destination-row tile (multiple of 8 sublanes); pad N so TM divides it.
    TM = min(row_tile, _round_up(N, 8))
    N_pad = _round_up(N, TM)

    # Additive mask: 0 where edge j->i (incl. self loops), -1e30 elsewhere; bf16
    # halves HBM traffic / VMEM of the largest input. Padded rows/cols fully masked.
    mask_bias = jnp.full((N_pad, N_pad), NEG_INF, dtype=jnp.float32)
    mask_bias = mask_bias.at[:N, :N].set((adj - 1.0) * (-NEG_INF))
    mask_bias = mask_bias.astype(jnp.bfloat16)

    # bf16 operands for the MXU matmuls (f32 accumulation inside the kernels).
    x_pad = jnp.zeros((N_pad, F_in), dtype=jnp.bfloat16).at[:N].set(
        x.astype(jnp.bfloat16))
    w_bf16 = w_full.astype(jnp.bfloat16)

    # Block-diagonal [H*C, 2H] so a_src/a_dst come from one narrow matmul.
    eye = jnp.eye(H, dtype=jnp.float32)
    a_src_mat = (att_src[:, :, None] * eye[:, None, :]).reshape(HC, H)
    a_dst_mat = (att_dst[:, :, None] * eye[:, None, :]).reshape(HC, H)
    att_cat = jnp.concatenate([a_src_mat, a_dst_mat], axis=1)        # [H*C, 2H]

    grid = (N_pad // TM,)
    cparams = pltpu.CompilerParams(
        dimension_semantics=("parallel",),        # row-tile axis carries TC parallelism
        vmem_limit_bytes=48 * 1024 * 1024,        # > 32 MiB scoped default, safe on v7x
    )

    # ---- Stage 1: fused projection + attention scalars -----------------------
    xh, a_all = pl.pallas_call(
        proj_kernel,
        grid=grid,
        in_specs=[
            pl.BlockSpec((TM, F_in), lambda i: (i, 0)),       # x row tile
            pl.BlockSpec((F_in, HC), lambda i: (0, 0)),       # W (all heads fused)
            pl.BlockSpec((HC, 2 * H), lambda i: (0, 0)),      # [A_src | A_dst]
        ],
        out_specs=(
            pl.BlockSpec((TM, HC), lambda i: (i, 0)),         # xh
            pl.BlockSpec((TM, 2 * H), lambda i: (i, 0)),      # a_src/a_dst
        ),
        out_shape=(
            jax.ShapeDtypeStruct((N_pad, HC), jnp.bfloat16),
            jax.ShapeDtypeStruct((N_pad, 2 * H), jnp.float32),
        ),
        compiler_params=cparams,
    )(x_pad, w_bf16, att_cat)

    a_srcT = a_all[:, :H].T            # [H, N_pad]  (tiny)
    a_dst = a_all[:, H:]               # [N_pad, H]
    bias2d = bias.reshape(1, HC).astype(jnp.float32)

    # ---- Stage 2: attention softmax + aggregation, tiled over destination rows
    out_pad = pl.pallas_call(
        functools.partial(attn_kernel, num_heads=H, head_dim=C),
        grid=grid,
        in_specs=[
            pl.BlockSpec((TM, H), lambda i: (i, 0)),          # a_dst row tile
            pl.BlockSpec((H, N_pad), lambda i: (0, 0)),       # a_src^T (resident)
            pl.BlockSpec((N_pad, HC), lambda i: (0, 0)),      # xh (resident)
            pl.BlockSpec((TM, N_pad), lambda i: (i, 0)),      # additive mask row tile
            pl.BlockSpec((1, HC), lambda i: (0, 0)),          # bias
        ],
        out_specs=pl.BlockSpec((TM, HC), lambda i: (i, 0)),   # direct [N, H*C] layout
        out_shape=jax.ShapeDtypeStruct((N_pad, HC), jnp.float32),
        compiler_params=cparams,
    )(a_dst, a_srcT, xh, mask_bias, bias2d)

    return out_pad[:N]


def dense_adjacency(edge_index, num_nodes):
    """adj[dst, src] = 1 for every edge src->dst, plus self loops."""
    src, dst = edge_index[0], edge_index[1]
    adj = jnp.zeros((num_nodes, num_nodes), dtype=jnp.float32)
    adj = adj.at[dst, src].set(1.0)
    idx = jnp.arange(num_nodes)
    adj = adj.at[idx, idx].set(1.0)  # add_self_loops=True
    return adj


def reference_gat(x, adj, w_full, att_src, att_dst, bias, num_heads):
    """Pure-JAX f32 reference with identical math, for a correctness check."""
    HC = w_full.shape[1]
    H = num_heads
    C = HC // H
    outs = []
    for h in range(H):
        w_h = w_full[:, h * C:(h + 1) * C]
        xh = x @ w_h                                      # [N, C]
        a_s = xh @ att_src[h][:, None]                    # [N, 1]
        a_d = xh @ att_dst[h][:, None]                    # [N, 1]
        e = a_d + a_s.T
        e = jnp.where(e > 0, e, 0.2 * e)
        e = jnp.where(adj > 0, e, NEG_INF)
        m = jnp.max(e, axis=-1, keepdims=True)
        p = jnp.where(adj > 0, jnp.exp(e - m), 0.0)
        alpha = p / jnp.sum(p, axis=-1, keepdims=True)
        outs.append(alpha @ xh + bias[h * C:(h + 1) * C])
    return jnp.concatenate(outs, axis=-1)


if __name__ == "__main__":
    key = jax.random.PRNGKey(0)

    # Small, deterministic problem sizes.
    N = 16            # number of graph nodes
    F_in = 8          # in_channels
    C = 8             # out_channels (per head)
    H = 4             # num_heads
    E = 32            # number of (directed) edges

    k_x, k_e, k_w, k_as, k_ad, k_b = jax.random.split(key, 6)

    x = jax.random.normal(k_x, (N, F_in), dtype=jnp.float32)
    edge_index = jax.random.randint(k_e, (2, E), 0, N, dtype=jnp.int32)

    # GATConv parameter shapes: lin [F_in, H*C], att_src/att_dst [H, C], bias [H*C].
    w_full = jax.random.normal(k_w, (F_in, H * C), dtype=jnp.float32) * 0.1
    att_src = jax.random.normal(k_as, (H, C), dtype=jnp.float32) * 0.1
    att_dst = jax.random.normal(k_ad, (H, C), dtype=jnp.float32) * 0.1
    bias = jax.random.normal(k_b, (H * C,), dtype=jnp.float32) * 0.01

    adj = dense_adjacency(edge_index, N)

    out = gat_forward(x, adj, w_full, att_src, att_dst, bias, num_heads=H)
    out = jax.block_until_ready(out)

    ref = reference_gat(x, adj, w_full, att_src, att_dst, bias, H)
    # bf16 matmul operands (f32 accumulation) -> relaxed tolerance vs f32 reference.
    np.testing.assert_allclose(np.asarray(out), np.asarray(ref), rtol=2e-2, atol=2e-2)
    assert out.shape == (N, H * C)

    print("KERNEL_OK")
</pallas_src>

<mosaic_0001>
module attributes {stable_mosaic.version = 11 : i64} {
  func.func @proj_kernel(%arg0: i32, %arg1: memref<16x8xbf16, #tpu.memory_space<vmem>>, %arg2: memref<8x32xbf16, #tpu.memory_space<vmem>>, %arg3: memref<32x8xf32, #tpu.memory_space<vmem>>, %arg4: memref<16x32xbf16, #tpu.memory_space<vmem>>, %arg5: memref<16x8xf32, #tpu.memory_space<vmem>>) attributes {dimension_semantics = [#tpu.dimension_semantics<parallel>], iteration_bounds = array<i64: 1>, scalar_prefetch = 0 : i64, scratch_operands = 0 : i64, tpu.core_type = #tpu.core_type<tc>, window_params = [{transform_indices = @transform_0, window_bounds = array<i64: 16, 8>}, {pipeline_mode = #tpu.pipeline_mode<synchronous>, transform_indices = @transform_1, window_bounds = array<i64: 8, 32>}, {pipeline_mode = #tpu.pipeline_mode<synchronous>, transform_indices = @transform_2, window_bounds = array<i64: 32, 8>}, {transform_indices = @transform_3, window_bounds = array<i64: 16, 32>}, {transform_indices = @transform_4, window_bounds = array<i64: 16, 8>}]} {
    %c0 = arith.constant 0 : index
    %c0_0 = arith.constant 0 : index
    %0 = vector.load %arg1[%c0, %c0_0] : memref<16x8xbf16, #tpu.memory_space<vmem>>, vector<16x8xbf16>
    %c0_1 = arith.constant 0 : index
    %c0_2 = arith.constant 0 : index
    %1 = vector.load %arg2[%c0_1, %c0_2] : memref<8x32xbf16, #tpu.memory_space<vmem>>, vector<8x32xbf16>
    %cst = arith.constant dense<0.000000e+00> : vector<16x32xf32>
    %2 = tpu.matmul %0, %1, %cst {dimension_numbers = #tpu.dot_dimension_numbers<[1], [0], [0], [1], [0, 0, 1, 1], [], []>} : vector<16x8xbf16>, vector<8x32xbf16>, vector<16x32xf32> -> vector<16x32xf32>
    %3 = arith.truncf %2 : vector<16x32xf32> to vector<16x32xbf16>
    %c0_3 = arith.constant 0 : index
    %c0_4 = arith.constant 0 : index
    %4 = vector.load %arg4[%c0_3, %c0_4] : memref<16x32xbf16, #tpu.memory_space<vmem>>, vector<16x32xbf16>
    tpu.vector_store %arg4[%c0_3, %c0_4], %3 {strides = array<i32>} : memref<16x32xbf16, #tpu.memory_space<vmem>>, vector<16x32xbf16>,
    %c0_5 = arith.constant 0 : index
    %c0_6 = arith.constant 0 : index
    %5 = vector.load %arg3[%c0_5, %c0_6] : memref<32x8xf32, #tpu.memory_space<vmem>>, vector<32x8xf32>
    %cst_7 = arith.constant dense<0.000000e+00> : vector<16x8xf32>
    %6 = tpu.matmul %2, %5, %cst_7 {dimension_numbers = #tpu.dot_dimension_numbers<[1], [0], [0], [1], [0, 0, 1, 1], [], []>} : vector<16x32xf32>, vector<32x8xf32>, vector<16x8xf32> -> vector<16x8xf32>
    %c0_8 = arith.constant 0 : index
    %c0_9 = arith.constant 0 : index
    %7 = vector.load %arg5[%c0_8, %c0_9] : memref<16x8xf32, #tpu.memory_space<vmem>>, vector<16x8xf32>
    tpu.vector_store %arg5[%c0_8, %c0_9], %6 {strides = array<i32>} : memref<16x8xf32, #tpu.memory_space<vmem>>, vector<16x8xf32>,
    return
  }
  func.func @transform_0(%arg0: i32) -> (i32, i32) {
    %c0_i32 = arith.constant 0 : i32
    %c0_i32_0 = arith.constant 0 : i32
    return %arg0, %c0_i32 : i32, i32
  }
  func.func @transform_1(%arg0: i32) -> (i32, i32) {
    %c0_i32 = arith.constant 0 : i32
    %c0_i32_0 = arith.constant 0 : i32
    %c0_i32_1 = arith.constant 0 : i32
    return %c0_i32, %c0_i32_0 : i32, i32
  }
  func.func @transform_2(%arg0: i32) -> (i32, i32) {
    %c0_i32 = arith.constant 0 : i32
    %c0_i32_0 = arith.constant 0 : i32
    %c0_i32_1 = arith.constant 0 : i32
    return %c0_i32, %c0_i32_0 : i32, i32
  }
  func.func @transform_3(%arg0: i32) -> (i32, i32) {
    %c0_i32 = arith.constant 0 : i32
    %c0_i32_0 = arith.constant 0 : i32
    return %arg0, %c0_i32 : i32, i32
  }
  func.func @transform_4(%arg0: i32) -> (i32, i32) {
    %c0_i32 = arith.constant 0 : i32
    %c0_i32_0 = arith.constant 0 : i32
    return %arg0, %c0_i32 : i32, i32
  }
}

</mosaic_0001>

<bundles_post_ra>
// kernel: tpu_custom_call.1
= control target key start
LH: loop header
LB: loop body
LE: loop exit
PB: predicated region body
PF: predicated region fallthrough
CT: control target
= control target key end

     0   :  { %vm30_vm0 = vcmask 1043456   ;;  %s210_s0 = inlined_call_operand.vmem [shape: bf16[16,8], index: 0, kind: input, shape index: {}]   ;;  %s211_s1 = inlined_call_operand.vmem [shape: bf16[8,32], index: 1, kind: input, shape index: {}]   ;;  %s212_s2 = inlined_call_operand.vmem [shape: f32[32,8], index: 2, kind: input, shape index: {}]   ;;  %s213_s3 = inlined_call_operand.hbm [shape: bf16[16,32], index: 3, kind: output, shape index: {0}]   ;;  %s214_s4 = inlined_call_operand.vmem [shape: f32[16,8], index: 4, kind: output, shape index: {1}]  }
   0x1   :  { %v20_v0 = vld [vmem:[%s211_s1] sm:$0xf]  ;;  %v56_v1 = vld [vmem:[%s212_s2 + $0x18] sm:$0xff]  ;;  %v55_v4 = vld [vmem:[%s212_s2 + $0x10] sm:$0xff] }
   0x2   :  { %v32_v2 = vsel %vm30_vm0, %v20_v0, 0  ;;  %v118_v3 = vld [vmem:[%s210_s0] sm:$0xff]  ;;  %76 = vmatpush.msra.mxu1 %v56_v1  ;;  %119 = vmatpush.msra.mxu2 %v56_v1 }
   0x3   :  { %10 = vsyncpa [#allocation3], 0  ;;  %41 = vmatpush.bf16.msra.mxu0 %v32_v2  ;;  %vm26_vm1 = vcmask 64512   ;;  %v54_v5 = vld [vmem:[%s212_s2 + $0x8] sm:$0xff]  ;;  %v53_v6 = vld [vmem:[%s212_s2] sm:$0xff]  ;;  %vm57_vm2 = vcmask 261120  }
   0x4   :  { %77 = vmatpush.msra.mxu1 %v55_v4  ;;  %120 = vmatpush.msra.mxu2 %v55_v4  ;;  %vm50_vm3 = vcmask 257024   ;;  %s152_s25 = smov [#allocation2]   ;;  %s95_s29 = sshll.u32 %s213_s3, 4  ;;  %s96_s29 = int_to_ptr.hbm [resolvable:$true] %s95_s29 }
   0x5   :  { %s93_s26 = sshll.u32 %s152_s25, 4  ;;  %s153_s2 = smov 64   ;;  %s94_s26 = int_to_ptr.vmem [resolvable:$true] %s93_s26 }
   0x6   :  { %115 = vmatmul.msk.bf16.vlgmr.msra.gmra.mxu0 %vm26_vm1, %v118_v3  ;;  %78 = vmatpush.msra.mxu1 %v54_v5  ;;  %s154_s30 = smov 4  }
   0x7   :  { %121 = vmatpush.msra.mxu2 %v54_v5 }
   0x8   :  { %79 = vmatpush.msra.mxu1 %v53_v6 }
   0x9   :  { %122 = vmatpush.msra.mxu2 %v53_v6 }
  0x83   :  { %v43_v7 = vpop.f32.mrf.mxu0 }
  0x84   :  { %v48_v8 = vpack.c.bf16 %v43_v7, %v43_v7  ;;  %116 = vmatmul.msk.f32.vlgmr.msra.gmra.mxu1 %vm57_vm2, %v43_v7 }
  0x86   :  { %51 = vst.msk [vmem:[#allocation2] sm:$0xf] %vm50_vm3, %v48_v8 }
  0x8b   :  { %v45_v9 = vpop.f32.mrf.mxu0 }
  0x8c   :  { %v49_v10 = vpack.c.bf16 %v45_v9, %v45_v9  ;;  %117 = vmatmul.msk.f32.vlgmr.msra.gmra.mxu2 %vm57_vm2, %v45_v9 }
  0x8e   :  { %52 = vst.msk [vmem:[#allocation2 + $0x4] sm:$0xf] %vm50_vm3, %v49_v10 }
  0x8f   :  { %101 = dma.vmem_to_hbm [thread:$0]  %s94_s26, 128, %s96_s29, [#allocation3], %s153_s2, %s153_s2, %s154_s30  }
 0x101   :  { %v81_v11 = vpop.f32.mrf.mxu1 }
 0x102   :  { %87 = vst.msk [vmem:[%s214_s4] sm:$0xff] %vm26_vm1, %v81_v11 }
 0x10f   :  { %v84_v12 = vpop.f32.mrf.mxu2 }
 0x110   :  { %88 = vst.msk [vmem:[%s214_s4 + $0x8] sm:$0xff] %vm26_vm1, %v84_v12 }
 0x111   :  { %150 = dma.done.wait [#allocation3], 128  }
 0x112   :  { %151 = vsyncadd [#allocation3], 4294967168 }
 0x113   :  { %110 = vsyncpa [#allocation3], 1 }

</bundles_post_ra>
